<compile_context>
chip_gen: v5e
topology: v5e:2x2
jax: 0.10.0
libtpu: 0.0.40
codegen_flags: <defaults>
</compile_context>

<pallas_src>
import jax
import jax.numpy as jnp
from jax.experimental import pallas as pl
from jax.experimental.pallas import tpu as pltpu


def _combine_context_kernel(x_ref, w_ref, b_ref, out_ref):
    # One MXU matmul on the pre-concatenated activation tile (f32 accumulate),
    # bias + relu epilogue on the VPU, single unpadded store.
    acc = jnp.dot(x_ref[...], w_ref[...], preferred_element_type=jnp.float32)
    acc = acc + b_ref[...].astype(jnp.float32)
    out_ref[...] = jnp.maximum(acc, 0.0).astype(out_ref.dtype)


def prepare_params(weight, bias):
    """One-time parameter transform -- module init, NOT per forward call.

    weight: [context_dims, total_input_dims]  (PyTorch nn.Linear layout)
    bias:   [context_dims]
    Returns (w_t [total_input_dims, context_dims], bias_2d [1, context_dims]).
    """
    return jnp.asarray(weight).T, jnp.asarray(bias)[None, :]


def _pick_batch_tile(B, batch_tile):
    if B > batch_tile:
        return batch_tile
    if B >= 64:
        # Aim for a grid of >= 2 steps so both TensorCores get work on v7x
        # (batch axis is marked "parallel"); costs one extra ~0.35us step on
        # single-TC v5e/v6e, which is negligible.
        half = ((-(-B // 2) + 7) // 8) * 8   # round_up(cdiv(B, 2), 8)
        if half < B:
            return half
    return B


def combine_context(current_input, fast_state, slow_state, w_t, bias_2d,
                    *, batch_tile=2048, min_pallas_batch=32):
    """current_input: [B, Dc] (or [Dc]), fast_state: [B, Df], slow_state: [B, Ds]
    w_t:     [Dc+Df+Ds, C]  pre-transposed weight (prepare_params)
    bias_2d: [1, C]
    returns: [B, C]
    """
    # Match PyTorch: promote 1-D inputs to [1, D].
    if current_input.ndim == 1:
        current_input = current_input[None, :]
    if fast_state.ndim == 1:
        fast_state = fast_state[None, :]
    if slow_state.ndim == 1:
        slow_state = slow_state[None, :]

    # Single packed activation (implicit torch.cat).  One DMA per grid step,
    # no VMEM scratch, no in-kernel packing stores.
    x = jnp.concatenate([current_input, fast_state, slow_state], axis=-1)
    B, Dtot = x.shape
    assert w_t.shape[0] == Dtot, "weight must be pre-transposed to [Dtot, C]"
    C = w_t.shape[1]

    # Tiny batches: pallas_call overhead exceeds the work -- let XLA fuse it.
    if B < min_pallas_batch:
        acc = jnp.dot(x, w_t, preferred_element_type=jnp.float32) + bias_2d
        return jnp.maximum(acc, 0.0).astype(x.dtype)

    TB = _pick_batch_tile(B, batch_tile)
    grid = (pl.cdiv(B, TB),)

    act_bytes = jnp.dtype(x.dtype).itemsize
    w_bytes = jnp.dtype(w_t.dtype).itemsize
    cost = pl.CostEstimate(
        flops=2 * B * Dtot * C,
        transcendentals=0,
        bytes_accessed=act_bytes * (B * Dtot + B * C) + w_bytes * (Dtot * C + C),
    )

    return pl.pallas_call(
        _combine_context_kernel,
        out_shape=jax.ShapeDtypeStruct((B, C), x.dtype),
        grid_spec=pltpu.PrefetchScalarGridSpec(
            num_scalar_prefetch=0,
            grid=grid,
            in_specs=[
                pl.BlockSpec((TB, Dtot), lambda i: (i, 0)),   # packed activations
                pl.BlockSpec((Dtot, C), lambda i: (0, 0)),    # weight: VMEM-resident
                pl.BlockSpec((1, C), lambda i: (0, 0)),       # bias:   VMEM-resident
            ],
            out_specs=pl.BlockSpec((TB, C), lambda i: (i, 0)),
        ),
        compiler_params=pltpu.CompilerParams(
            dimension_semantics=("parallel",),       # batch axis -> both TCs on v7x
            vmem_limit_bytes=32 * 1024 * 1024,       # far above the ~MiB resident set
        ),
        cost_estimate=cost,
    )(x, w_t, bias_2d)


if __name__ == "__main__":
    # Shapes consistent with the module's forward; batch large enough to
    # exercise the Pallas path (>= min_pallas_batch) with a 2-step grid.
    batch = 256
    current_input_dims = 16
    fast_state_dims = 8
    slow_state_dims = 8
    context_dims = 32
    total_input_dims = current_input_dims + fast_state_dims + slow_state_dims

    key = jax.random.PRNGKey(0)
    k_xc, k_xf, k_xs, k_w, k_b = jax.random.split(key, 5)

    current_input = jax.random.normal(k_xc, (batch, current_input_dims), jnp.float32)
    fast_state = jax.random.normal(k_xf, (batch, fast_state_dims), jnp.float32)
    slow_state = jax.random.normal(k_xs, (batch, slow_state_dims), jnp.float32)

    # Deterministic parameter init (stand-in for initialize_weights):
    # Kaiming-uniform-like scale for the linear layer.
    limit = 1.0 / jnp.sqrt(jnp.float32(total_input_dims))
    weight = jax.random.uniform(
        k_w, (context_dims, total_input_dims), jnp.float32, -limit, limit)
    bias = jax.random.uniform(k_b, (context_dims,), jnp.float32, -limit, limit)

    # One-time parameter prep (transpose only) -- outside the per-call path.
    w_t, bias_2d = prepare_params(weight, bias)

    fwd = jax.jit(combine_context)
    out = jax.block_until_ready(fwd(current_input, fast_state, slow_state, w_t, bias_2d))

    # Reference check in plain JAX against the original PyTorch-layout params.
    combined = jnp.concatenate([current_input, fast_state, slow_state], axis=-1)
    ref = jnp.maximum(combined @ weight.T + bias, 0.0)
    assert out.shape == (batch, context_dims)
    assert jnp.allclose(out, ref, atol=1e-5, rtol=1e-5)

    print("KERNEL_OK")
</pallas_src>

<mosaic_0001>
module attributes {stable_mosaic.version = 11 : i64} {
  func.func @_combine_context_kernel(%arg0: i32, %arg1: memref<128x32xf32, #tpu.memory_space<vmem>>, %arg2: memref<32x32xf32, #tpu.memory_space<vmem>>, %arg3: memref<1x32xf32, #tpu.memory_space<vmem>>, %arg4: memref<128x32xf32, #tpu.memory_space<vmem>>) attributes {dimension_semantics = [#tpu.dimension_semantics<parallel>], iteration_bounds = array<i64: 2>, scalar_prefetch = 0 : i64, scratch_operands = 0 : i64, tpu.core_type = #tpu.core_type<tc>, window_params = [{transform_indices = @transform_0, window_bounds = array<i64: 128, 32>}, {pipeline_mode = #tpu.pipeline_mode<synchronous>, transform_indices = @transform_1, window_bounds = array<i64: 32, 32>}, {pipeline_mode = #tpu.pipeline_mode<synchronous>, transform_indices = @transform_2, window_bounds = array<i64: 1, 32>}, {transform_indices = @transform_3, window_bounds = array<i64: 128, 32>}]} {
    %c0 = arith.constant 0 : index
    %c0_0 = arith.constant 0 : index
    %0 = vector.load %arg1[%c0, %c0_0] : memref<128x32xf32, #tpu.memory_space<vmem>>, vector<128x32xf32>
    %c0_1 = arith.constant 0 : index
    %c0_2 = arith.constant 0 : index
    %1 = vector.load %arg2[%c0_1, %c0_2] : memref<32x32xf32, #tpu.memory_space<vmem>>, vector<32x32xf32>
    %cst = arith.constant dense<0.000000e+00> : vector<128x32xf32>
    %2 = tpu.matmul %0, %1, %cst {dimension_numbers = #tpu.dot_dimension_numbers<[1], [0], [0], [1], [0, 0, 1, 1], [], []>} : vector<128x32xf32>, vector<32x32xf32>, vector<128x32xf32> -> vector<128x32xf32>
    %c0_3 = arith.constant 0 : index
    %c0_4 = arith.constant 0 : index
    %3 = vector.load %arg3[%c0_3, %c0_4] : memref<1x32xf32, #tpu.memory_space<vmem>>, vector<1x32xf32>
    %4 = vector.broadcast %3 : vector<1x32xf32> to vector<128x32xf32>
    %5 = arith.addf %2, %4 : vector<128x32xf32>
    %cst_5 = arith.constant 0.000000e+00 : f32
    %6 = vector.broadcast %cst_5 : f32 to vector<128x32xf32>
    %7 = arith.maximumf %5, %6 : vector<128x32xf32>
    %c0_6 = arith.constant 0 : index
    %c0_7 = arith.constant 0 : index
    %8 = vector.load %arg4[%c0_6, %c0_7] : memref<128x32xf32, #tpu.memory_space<vmem>>, vector<128x32xf32>
    tpu.vector_store %arg4[%c0_6, %c0_7], %7 {strides = array<i32>} : memref<128x32xf32, #tpu.memory_space<vmem>>, vector<128x32xf32>,
    return
  }
  func.func @transform_0(%arg0: i32) -> (i32, i32) {
    %c0_i32 = arith.constant 0 : i32
    %c0_i32_0 = arith.constant 0 : i32
    return %arg0, %c0_i32 : i32, i32
  }
  func.func @transform_1(%arg0: i32) -> (i32, i32) {
    %c0_i32 = arith.constant 0 : i32
    %c0_i32_0 = arith.constant 0 : i32
    %c0_i32_1 = arith.constant 0 : i32
    return %c0_i32, %c0_i32_0 : i32, i32
  }
  func.func @transform_2(%arg0: i32) -> (i32, i32) {
    %c0_i32 = arith.constant 0 : i32
    %c0_i32_0 = arith.constant 0 : i32
    %c0_i32_1 = arith.constant 0 : i32
    return %c0_i32, %c0_i32_0 : i32, i32
  }
  func.func @transform_3(%arg0: i32) -> (i32, i32) {
    %c0_i32 = arith.constant 0 : i32
    %c0_i32_0 = arith.constant 0 : i32
    return %arg0, %c0_i32 : i32, i32
  }
}

</mosaic_0001>

<bundles_post_ra>
// kernel: combine_context.1
= control target key start
LH: loop header
LB: loop body
LE: loop exit
PB: predicated region body
PF: predicated region fallthrough
CT: control target
= control target key end

     0   :  { %s476_s12 = smov 0   ;;  %s583_s0 = inlined_call_operand.vmem [shape: f32[256,32], index: 0, kind: input, shape index: {}]   ;;  %s584_s1 = inlined_call_operand.vmem [shape: f32[32,32], index: 1, kind: input, shape index: {}]   ;;  %s585_s2 = inlined_call_operand.vmem [shape: f32[1,32], index: 2, kind: input, shape index: {}]   ;;  %s586_s3 = inlined_call_operand.vmem [shape: f32[256,32], index: 3, kind: output, shape index: {}]  }
   0x1 LB: > { %s400_s13 = sadd.s32 4294967295, %s454_s12   ;;  %p404_p0 = scmp.ge.s32.totalorder %s454_s12, 1  ;;  %s454_s12 = sphi %s476_s12, %s13_s12  }
   0x2   : > { %p138_p1 = scmp.lt.s32.totalorder %s454_s12, 3 }
   0x4   : > { %p139_p2 = pnand %p404_p0, %p138_p1 }
   0x5   : > { %s405_s18 = sshll.u32 (!%p139_p2), %s400_s13, 4 }
   0x6   : > { %142 = sbr.rel (%p139_p2) target bundleno = 181 (0xb5), region = 32  ;;  %p163_p3 = scmp.lt.s32.totalorder (!%p139_p2), %s405_s18, 31 }
   0xb   : > { %v193_v0 = vld [vmem:[%s584_s1 + $0x18] sm:$0xff]  ;;  %v192_v1 = vld [vmem:[%s584_s1 + $0x10] sm:$0xff]  ;;  %v191_v2 = vld [vmem:[%s584_s1 + $0x8] sm:$0xff]  ;;  %s588_s18 = smov (!%p163_p3, %s405_s18), 31  ;;  %vm198_vm0 = vcmask 261120  }
   0xc   : > { %428 = vmatpush.msra.mxu2 %v193_v0  ;;  %429 = vmatpush.msra.mxu3 %v193_v0  ;;  %v190_v3 = vld [vmem:[%s584_s1] sm:$0xff]  ;;  %s406_s23 = sshll.u32 %s588_s18, 3 }
   0xd   : > { %259 = vmatpush.msra.mxu0 %v193_v0  ;;  %427 = vmatpush.msra.mxu1 %v193_v0  ;;  %s504_s26 = scalar_lea.vmem %s583_s0, %s406_s23  ;;  %v447_v20 = vld [vmem:[%s585_s2] ss:$0 sm:$0xff]  ;;  %s546_s4 = scalar_lea.vmem %s586_s3, %s406_s23 }
   0xe   : > { %431 = vmatpush.msra.mxu2 %v192_v1  ;;  %432 = vmatpush.msra.mxu3 %v192_v1  ;;  %v182_v4 = vld [vmem:[%s504_s26 + $0x40] sm:$0xff]  ;;  %v183_v8 = vld [vmem:[%s504_s26 + $0x48] sm:$0xff]  ;;  %v184_v12 = vld [vmem:[%s504_s26 + $0x50] sm:$0xff] }
   0xf   : > { %260 = vmatpush.msra.mxu0 %v192_v1  ;;  %430 = vmatpush.msra.mxu1 %v192_v1  ;;  %v186_v5 = vld [vmem:[%s504_s26 + $0x60] sm:$0xff]  ;;  %v187_v9 = vld [vmem:[%s504_s26 + $0x68] sm:$0xff]  ;;  %v188_v13 = vld [vmem:[%s504_s26 + $0x70] sm:$0xff] }
  0x10   : > { %434 = vmatpush.msra.mxu2 %v191_v2  ;;  %435 = vmatpush.msra.mxu3 %v191_v2  ;;  %v174_v6 = vld [vmem:[%s504_s26] sm:$0xff]  ;;  %v175_v10 = vld [vmem:[%s504_s26 + $0x8] sm:$0xff]  ;;  %v176_v14 = vld [vmem:[%s504_s26 + $0x10] sm:$0xff] }
  0x11   : > { %261 = vmatpush.msra.mxu0 %v191_v2  ;;  %433 = vmatpush.msra.mxu1 %v191_v2  ;;  %v178_v7 = vld [vmem:[%s504_s26 + $0x20] sm:$0xff]  ;;  %v179_v11 = vld [vmem:[%s504_s26 + $0x28] sm:$0xff]  ;;  %v180_v15 = vld [vmem:[%s504_s26 + $0x30] sm:$0xff] }
  0x12   : > { %437 = vmatpush.msra.mxu2 %v190_v3  ;;  %438 = vmatpush.msra.mxu3 %v190_v3  ;;  %v185_v16 = vld [vmem:[%s504_s26 + $0x58] sm:$0xff] }
  0x13   : > { %417 = vmatmul.msk.f32.vlgmr.msra.gmra.mxu2 %vm198_vm0, %v182_v4  ;;  %421 = vmatmul.msk.f32.vlgmr.msra.gmra.mxu3 %vm198_vm0, %v186_v5  ;;  %v189_v17 = vld [vmem:[%s504_s26 + $0x78] sm:$0xff] }
  0x14   : > { %262 = vmatpush.msra.mxu0 %v190_v3  ;;  %436 = vmatpush.msra.mxu1 %v190_v3  ;;  %v177_v18 = vld [vmem:[%s504_s26 + $0x18] sm:$0xff] }
  0x15   : > { %409 = vmatmul.msk.f32.vlgmr.msra.gmra.mxu0 %vm198_vm0, %v174_v6  ;;  %413 = vmatmul.msk.f32.vlgmr.msra.gmra.mxu1 %vm198_vm0, %v178_v7  ;;  %v181_v19 = vld [vmem:[%s504_s26 + $0x38] sm:$0xff] }
  0x1b   : > { %418 = vmatmul.msk.f32.gmra.mxu2 %vm198_vm0, %v183_v8  ;;  %422 = vmatmul.msk.f32.gmra.mxu3 %vm198_vm0, %v187_v9 }
  0x1d   : > { %410 = vmatmul.msk.f32.gmra.mxu0 %vm198_vm0, %v175_v10  ;;  %414 = vmatmul.msk.f32.gmra.mxu1 %vm198_vm0, %v179_v11 }
  0x23   : > { %419 = vmatmul.msk.f32.gmra.mxu2 %vm198_vm0, %v184_v12  ;;  %423 = vmatmul.msk.f32.gmra.mxu3 %vm198_vm0, %v188_v13 }
  0x25   : > { %411 = vmatmul.msk.f32.gmra.mxu0 %vm198_vm0, %v176_v14  ;;  %415 = vmatmul.msk.f32.gmra.mxu1 %vm198_vm0, %v180_v15 }
  0x2b   : > { %420 = vmatmul.msk.f32.gmra.mxu2 %vm198_vm0, %v185_v16  ;;  %424 = vmatmul.msk.f32.gmra.mxu3 %vm198_vm0, %v189_v17 }
  0x2d   : > { %412 = vmatmul.msk.f32.gmra.mxu0 %vm198_vm0, %v177_v18  ;;  %416 = vmatmul.msk.f32.gmra.mxu1 %vm198_vm0, %v181_v19 }
  0x92   : > { %v264_v21 = vpop.f32.mrf.mxu0  ;;  %v276_v22 = vpop.f32.mrf.mxu1 }
  0x93   : > { %v265_v23 = vadd.f32 %v447_v20, %v264_v21  ;;  %v277_v24 = vadd.f32 %v447_v20, %v276_v22 }
  0x95   : > { %v312_v25 = vmax.f32 %v265_v23, 0.0  ;;  %v316_v26 = vmax.f32 %v277_v24, 0.0 }
  0x96   : > { %v288_v27 = vpop.f32.mrf.mxu2  ;;  %v300_v28 = vpop.f32.mrf.mxu3 }
  0x97   : > { %328 = vst.msk [vmem:[%s546_s4] sm:$0xff] %vm198_vm0, %v312_v25  ;;  %v289_v29 = vadd.f32 %v447_v20, %v288_v27  ;;  %v301_v30 = vadd.f32 %v447_v20, %v300_v28 }
  0x98   : > { %332 = vst.msk [vmem:[%s546_s4 + $0x20] sm:$0xff] %vm198_vm0, %v316_v26 }
  0x99   : > { %v320_v31 = vmax.f32 %v289_v29, 0.0  ;;  %v324_v32 = vmax.f32 %v301_v30, 0.0 }
  0x9a   : > { %v267_v33 = vpop.f32.mrf.mxu0  ;;  %v279_v34 = vpop.f32.mrf.mxu1 }
  0x9b   : > { %336 = vst.msk [vmem:[%s546_s4 + $0x40] sm:$0xff] %vm198_vm0, %v320_v31  ;;  %v268_v35 = vadd.f32 %v447_v20, %v267_v33  ;;  %v280_v36 = vadd.f32 %v447_v20, %v279_v34 }
  0x9c   : > { %340 = vst.msk [vmem:[%s546_s4 + $0x60] sm:$0xff] %vm198_vm0, %v324_v32 }
  0x9d   : > { %v313_v37 = vmax.f32 %v268_v35, 0.0  ;;  %v317_v38 = vmax.f32 %v280_v36, 0.0 }
  0x9e   : > { %v291_v39 = vpop.f32.mrf.mxu2  ;;  %v303_v40 = vpop.f32.mrf.mxu3 }
  0x9f   : > { %329 = vst.msk [vmem:[%s546_s4 + $0x8] sm:$0xff] %vm198_vm0, %v313_v37  ;;  %v292_v41 = vadd.f32 %v447_v20, %v291_v39  ;;  %v304_v42 = vadd.f32 %v447_v20, %v303_v40 }
  0xa0   : > { %333 = vst.msk [vmem:[%s546_s4 + $0x28] sm:$0xff] %vm198_vm0, %v317_v38 }
  0xa1   : > { %v321_v43 = vmax.f32 %v292_v41, 0.0  ;;  %v325_v44 = vmax.f32 %v304_v42, 0.0 }
  0xa2   : > { %v270_v45 = vpop.f32.mrf.mxu0  ;;  %v282_v46 = vpop.f32.mrf.mxu1 }
  0xa3   : > { %337 = vst.msk [vmem:[%s546_s4 + $0x48] sm:$0xff] %vm198_vm0, %v321_v43  ;;  %v271_v47 = vadd.f32 %v447_v20, %v270_v45  ;;  %v283_v48 = vadd.f32 %v447_v20, %v282_v46 }
  0xa4   : > { %341 = vst.msk [vmem:[%s546_s4 + $0x68] sm:$0xff] %vm198_vm0, %v325_v44 }
  0xa5   : > { %v314_v49 = vmax.f32 %v271_v47, 0.0  ;;  %v318_v50 = vmax.f32 %v283_v48, 0.0 }
  0xa6   : > { %v294_v51 = vpop.f32.mrf.mxu2  ;;  %v306_v52 = vpop.f32.mrf.mxu3 }
  0xa7   : > { %330 = vst.msk [vmem:[%s546_s4 + $0x10] sm:$0xff] %vm198_vm0, %v314_v49  ;;  %v295_v53 = vadd.f32 %v447_v20, %v294_v51  ;;  %v307_v54 = vadd.f32 %v447_v20, %v306_v52 }
  0xa8   : > { %334 = vst.msk [vmem:[%s546_s4 + $0x30] sm:$0xff] %vm198_vm0, %v318_v50 }
  0xa9   : > { %v322_v55 = vmax.f32 %v295_v53, 0.0  ;;  %v326_v56 = vmax.f32 %v307_v54, 0.0 }
  0xaa   : > { %v273_v57 = vpop.f32.mrf.mxu0  ;;  %v285_v58 = vpop.f32.mrf.mxu1 }
  0xab   : > { %338 = vst.msk [vmem:[%s546_s4 + $0x50] sm:$0xff] %vm198_vm0, %v322_v55  ;;  %v274_v59 = vadd.f32 %v447_v20, %v273_v57  ;;  %v286_v60 = vadd.f32 %v447_v20, %v285_v58 }
  0xac   : > { %342 = vst.msk [vmem:[%s546_s4 + $0x70] sm:$0xff] %vm198_vm0, %v326_v56 }
  0xad   : > { %v315_v61 = vmax.f32 %v274_v59, 0.0  ;;  %v319_v62 = vmax.f32 %v286_v60, 0.0 }
  0xae   : > { %v297_v63 = vpop.f32.mrf.mxu2  ;;  %v309_v0 = vpop.f32.mrf.mxu3 }
  0xaf   : > { %331 = vst.msk [vmem:[%s546_s4 + $0x18] sm:$0xff] %vm198_vm0, %v315_v61  ;;  %v298_v1 = vadd.f32 %v447_v20, %v297_v63  ;;  %v310_v2 = vadd.f32 %v447_v20, %v309_v0 }
  0xb0   : > { %335 = vst.msk [vmem:[%s546_s4 + $0x38] sm:$0xff] %vm198_vm0, %v319_v62 }
  0xb1   : > { %v323_v3 = vmax.f32 %v298_v1, 0.0  ;;  %v327_v4 = vmax.f32 %v310_v2, 0.0 }
  0xb3   : > { %339 = vst.msk [vmem:[%s546_s4 + $0x58] sm:$0xff] %vm198_vm0, %v323_v3 }
  0xb4   : > { %343 = vst.msk [vmem:[%s546_s4 + $0x78] sm:$0xff] %vm198_vm0, %v327_v4 }
  0xb5 PF: > { %s13_s12 = sadd.s32 1, %s454_s12  }
  0xb6   : > { %p10_p4 = scmp.ge.s32.totalorder %s13_s12, 4  }
  0xb8   :  { %12 = sbr.rel (!%p10_p4) target bundleno = 1 (0x1), region = 62 }

</bundles_post_ra>
